<compile_context>
chip_gen: v7x
topology: tpu7x:2x2x1
jax: 0.10.0
libtpu: 0.0.40
codegen_flags: <defaults>
</compile_context>

<pallas_src>
import functools
import math

import jax
import jax.numpy as jnp
from jax import lax
from jax.experimental import pallas as pl
from jax.experimental.pallas import tpu as pltpu


def _round_up(x: int, m: int) -> int:
    return (x + m - 1) // m * m


def _wp_linear_kernel(x_ref, w_ref, b_ref, o_ref, acc_ref, *, cast_bf16):
    """One (i, j, k) grid step of the tiled matmul.

    x_ref:   (tm, tk)  input tile
    w_ref:   (tn, tk)  weight tile in PyTorch [out, in] layout (no transpose)
    b_ref:   (1, tn)   bias tile
    o_ref:   (tm, tn)  output tile (written on last k step only)
    acc_ref: (tm, tn)  f32 accumulator scratch, resident across the k axis
    """
    k = pl.program_id(2)

    @pl.when(k == 0)
    def _():
        acc_ref[...] = jnp.zeros_like(acc_ref)

    x = x_ref[...]
    w = w_ref[...]
    if cast_bf16:
        # MXU is bf16-native on v5e/v6e/v7x; keep f32 accumulation below.
        x = x.astype(jnp.bfloat16)
        w = w.astype(jnp.bfloat16)

    # Contract last dim of x with last dim of w (== X @ W.T) on the MXU;
    # avoids any weight transpose/relayout.
    acc_ref[...] += lax.dot_general(
        x, w,
        dimension_numbers=(((1,), (1,)), ((), ())),
        preferred_element_type=jnp.float32)

    @pl.when(k == pl.num_programs(2) - 1)
    def _():
        # Bias add + cast once, in f32, then a single lane-dense store.
        o_ref[...] = (acc_ref[...] + b_ref[...].astype(jnp.float32)).astype(o_ref.dtype)


def weight_parallel_linear(x, weight, bias, world_size, *,
                           tm_cap=512, tn_cap=1024, tk_cap=1024,
                           mxu_bf16=False):
    """Pallas implementation of WeightParallelLinear.forward.

    x:      [..., in_features]
    weight: [out_features, in_features]   (PyTorch nn.Linear layout)
    bias:   [out_features]
    Returns [..., out_features] ordered exactly as torch.cat of the world_size
    column partitions (i.e. the natural out_features order).
    """
    *lead, K = x.shape
    N, K2 = weight.shape
    assert K == K2, "last dim of x must equal in_features"
    assert N % world_size == 0, "out_features must divide by world_size"

    M = math.prod(lead) if lead else 1
    x2 = x.reshape(M, K)
    b2 = bias.reshape(1, N)

    # 128-aligned MXU-shaped tiles; pad the problem up to the tile grid so the
    # kernel never sees ragged edges (zero padding is exact for a matmul).
    tm = min(tm_cap, _round_up(M, 128))
    tn = min(tn_cap, _round_up(N, 128))
    tk = min(tk_cap, _round_up(K, 128))

    Mp, Np, Kp = _round_up(M, tm), _round_up(N, tn), _round_up(K, tk)
    if (Mp, Kp) != (M, K):
        x2 = jnp.pad(x2, ((0, Mp - M), (0, Kp - K)))
    w2 = weight
    if (Np, Kp) != (N, K):
        w2 = jnp.pad(weight, ((0, Np - N), (0, Kp - K)))
    if Np != N:
        b2 = jnp.pad(b2, ((0, 0), (0, Np - N)))

    grid = (Mp // tm, Np // tn, Kp // tk)

    cast_bf16 = bool(mxu_bf16) and x2.dtype == jnp.float32

    # Decode-style small-M calls are weight-HBM-bandwidth bound: deepen the
    # weight pipeline so DMA issue latency is hidden behind more inflight tiles.
    if Mp <= 128 and grid[2] >= 3:
        w_spec = pl.BlockSpec((tn, tk), lambda i, j, k: (j, k),
                              pipeline_mode=pl.Buffered(3))
    else:
        w_spec = pl.BlockSpec((tn, tk), lambda i, j, k: (j, k))

    itemsize = jnp.dtype(x2.dtype).itemsize
    cost = pl.CostEstimate(
        flops=2 * Mp * Np * Kp,
        bytes_accessed=(Mp * Kp * itemsize
                        + Np * Kp * jnp.dtype(w2.dtype).itemsize
                        + Mp * Np * itemsize),
        transcendentals=0)

    out = pl.pallas_call(
        functools.partial(_wp_linear_kernel, cast_bf16=cast_bf16),
        out_shape=jax.ShapeDtypeStruct((Mp, Np), x.dtype),
        grid_spec=pltpu.PrefetchScalarGridSpec(
            num_scalar_prefetch=0,
            grid=grid,
            in_specs=[
                pl.BlockSpec((tm, tk), lambda i, j, k: (i, k)),   # x tile
                w_spec,                                           # weight tile ([out, in])
                pl.BlockSpec((1, tn), lambda i, j, k: (0, j)),    # bias tile
            ],
            out_specs=pl.BlockSpec((tm, tn), lambda i, j, k: (i, j)),
            scratch_shapes=[pltpu.VMEM((tm, tn), jnp.float32)],
        ),
        compiler_params=pltpu.CompilerParams(
            dimension_semantics=("parallel", "parallel", "arbitrary"),
            vmem_limit_bytes=48 * 1024 * 1024),
        cost_estimate=cost,
    )(x2, w2, b2)

    if (Mp, Np) != (M, N):
        out = out[:M, :N]
    return out.reshape(*lead, N)


if __name__ == "__main__":
    key = jax.random.PRNGKey(0)
    kx, kw, kb, kx2, kw2, kb2 = jax.random.split(key, 6)

    # --- case 1: TPU-tile-friendly shapes, f32 operands (module default) ---
    batch, seq = 2, 8
    in_features, out_features, world_size = 128, 256, 2

    xavier_std = (2.0 / (in_features + out_features)) ** 0.5
    weight_f32 = jax.random.normal(kw, (out_features, in_features), jnp.float32) * xavier_std
    bias_f32 = jax.random.normal(kb, (out_features,), jnp.float32) * 0.01
    x_f32 = jax.random.normal(kx, (batch, seq, in_features), jnp.float32)

    fn = jax.jit(functools.partial(weight_parallel_linear, world_size=world_size))

    y32 = jax.block_until_ready(fn(x_f32, weight_f32, bias_f32))
    y32_ref = x_f32 @ weight_f32.T + bias_f32
    assert y32.shape == (batch, seq, out_features)
    assert jnp.allclose(y32, y32_ref, atol=1e-4, rtol=1e-4), "f32 mismatch vs reference"

    # --- case 2: bf16 operands (MXU-native), f32 bias, f32 accumulation ---
    x_bf = x_f32.astype(jnp.bfloat16)
    w_bf = weight_f32.astype(jnp.bfloat16)
    y16 = jax.block_until_ready(fn(x_bf, w_bf, bias_f32))
    y16_ref = x_bf.astype(jnp.float32) @ w_bf.astype(jnp.float32).T + bias_f32
    assert y16.shape == (batch, seq, out_features)
    assert jnp.allclose(y16.astype(jnp.float32), y16_ref, atol=2e-2, rtol=2e-2), \
        "bf16 mismatch vs reference"

    # --- case 3: awkward (non-128-multiple) shapes exercise the pad-to-tile path ---
    b3, s3, in3, out3, ws3 = 3, 5, 96, 160, 2
    w3 = jax.random.normal(kw2, (out3, in3), jnp.float32) * 0.05
    bi3 = jax.random.normal(kb2, (out3,), jnp.float32) * 0.01
    x3 = jax.random.normal(kx2, (b3, s3, in3), jnp.float32)
    fn3 = jax.jit(functools.partial(weight_parallel_linear, world_size=ws3))
    y3 = jax.block_until_ready(fn3(x3, w3, bi3))
    y3_ref = x3 @ w3.T + bi3
    assert y3.shape == (b3, s3, out3)
    assert jnp.allclose(y3, y3_ref, atol=1e-4, rtol=1e-4), "padded-shape mismatch vs reference"

    print("KERNEL_OK")
</pallas_src>

<mosaic_0001>
module attributes {stable_mosaic.version = 11 : i64} {
  func.func @_wp_linear_kernel(%arg0: i32, %arg1: i32, %arg2: i32, %arg3: memref<128x128xf32, #tpu.memory_space<vmem>>, %arg4: memref<256x128xf32, #tpu.memory_space<vmem>>, %arg5: memref<1x256xf32, #tpu.memory_space<vmem>>, %arg6: memref<128x256xf32, #tpu.memory_space<vmem>>, %arg7: memref<128x256xf32, #tpu.memory_space<vmem>>) attributes {dimension_semantics = [#tpu.dimension_semantics<parallel>, #tpu.dimension_semantics<parallel>, #tpu.dimension_semantics<arbitrary>], iteration_bounds = array<i64: 1, 1, 1>, scalar_prefetch = 0 : i64, scratch_operands = 1 : i64, tpu.core_type = #tpu.core_type<tc>, window_params = [{transform_indices = @transform_0, window_bounds = array<i64: 128, 128>}, {transform_indices = @transform_1, window_bounds = array<i64: 256, 128>}, {transform_indices = @transform_2, window_bounds = array<i64: 1, 256>}, {transform_indices = @transform_3, window_bounds = array<i64: 128, 256>}]} {
    %c0_i32 = arith.constant 0 : i32
    %0 = arith.cmpi eq, %arg2, %c0_i32 : i32
    %1 = arith.extui %0 : i1 to i32
    %c0_i32_0 = arith.constant 0 : i32
    %2 = arith.cmpi ne, %1, %c0_i32_0 : i32
    scf.if %2 {
      %cst_10 = arith.constant 0.000000e+00 : f32
      %12 = vector.broadcast %cst_10 : f32 to vector<128x256xf32>
      %c0_11 = arith.constant 0 : index
      %c0_12 = arith.constant 0 : index
      %13 = vector.load %arg7[%c0_11, %c0_12] : memref<128x256xf32, #tpu.memory_space<vmem>>, vector<128x256xf32>
      tpu.vector_store %arg7[%c0_11, %c0_12], %12 {strides = array<i32>} : memref<128x256xf32, #tpu.memory_space<vmem>>, vector<128x256xf32>,
    } else {
    }
    %c0 = arith.constant 0 : index
    %c0_1 = arith.constant 0 : index
    %3 = vector.load %arg3[%c0, %c0_1] : memref<128x128xf32, #tpu.memory_space<vmem>>, vector<128x128xf32>
    %c0_2 = arith.constant 0 : index
    %c0_3 = arith.constant 0 : index
    %4 = vector.load %arg4[%c0_2, %c0_3] : memref<256x128xf32, #tpu.memory_space<vmem>>, vector<256x128xf32>
    %c0_4 = arith.constant 0 : index
    %c0_5 = arith.constant 0 : index
    %5 = vector.load %arg7[%c0_4, %c0_5] : memref<128x256xf32, #tpu.memory_space<vmem>>, vector<128x256xf32>
    %cst = arith.constant dense<0.000000e+00> : vector<128x256xf32>
    %6 = tpu.matmul %3, %4, %cst {dimension_numbers = #tpu.dot_dimension_numbers<[1], [1], [0], [0], [0, 0, 1, 0], [], []>} : vector<128x128xf32>, vector<256x128xf32>, vector<128x256xf32> -> vector<128x256xf32>
    %7 = arith.addf %5, %6 : vector<128x256xf32>
    %c0_6 = arith.constant 0 : index
    %c0_7 = arith.constant 0 : index
    %8 = vector.load %arg7[%c0_6, %c0_7] : memref<128x256xf32, #tpu.memory_space<vmem>>, vector<128x256xf32>
    tpu.vector_store %arg7[%c0_6, %c0_7], %7 {strides = array<i32>} : memref<128x256xf32, #tpu.memory_space<vmem>>, vector<128x256xf32>,
    %c0_i32_8 = arith.constant 0 : i32
    %9 = arith.cmpi eq, %arg2, %c0_i32_8 : i32
    %10 = arith.extui %9 : i1 to i32
    %c0_i32_9 = arith.constant 0 : i32
    %11 = arith.cmpi ne, %10, %c0_i32_9 : i32
    scf.if %11 {
      %c0_10 = arith.constant 0 : index
      %c0_11 = arith.constant 0 : index
      %12 = vector.load %arg7[%c0_10, %c0_11] : memref<128x256xf32, #tpu.memory_space<vmem>>, vector<128x256xf32>
      %c0_12 = arith.constant 0 : index
      %c0_13 = arith.constant 0 : index
      %13 = vector.load %arg5[%c0_12, %c0_13] : memref<1x256xf32, #tpu.memory_space<vmem>>, vector<1x256xf32>
      %14 = vector.broadcast %13 : vector<1x256xf32> to vector<128x256xf32>
      %15 = arith.addf %12, %14 : vector<128x256xf32>
      %c0_14 = arith.constant 0 : index
      %c0_15 = arith.constant 0 : index
      %16 = vector.load %arg6[%c0_14, %c0_15] : memref<128x256xf32, #tpu.memory_space<vmem>>, vector<128x256xf32>
      tpu.vector_store %arg6[%c0_14, %c0_15], %15 {strides = array<i32>} : memref<128x256xf32, #tpu.memory_space<vmem>>, vector<128x256xf32>,
    } else {
    }
    return
  }
  func.func @transform_0(%arg0: i32, %arg1: i32, %arg2: i32) -> (i32, i32) {
    %c0_i32 = arith.constant 0 : i32
    return %arg0, %arg2 : i32, i32
  }
  func.func @transform_1(%arg0: i32, %arg1: i32, %arg2: i32) -> (i32, i32) {
    %c0_i32 = arith.constant 0 : i32
    return %arg1, %arg2 : i32, i32
  }
  func.func @transform_2(%arg0: i32, %arg1: i32, %arg2: i32) -> (i32, i32) {
    %c0_i32 = arith.constant 0 : i32
    %c0_i32_0 = arith.constant 0 : i32
    return %c0_i32, %arg1 : i32, i32
  }
  func.func @transform_3(%arg0: i32, %arg1: i32, %arg2: i32) -> (i32, i32) {
    %c0_i32 = arith.constant 0 : i32
    return %arg0, %arg1 : i32, i32
  }
}

</mosaic_0001>

<bundles_post_ra>
// kernel: weight_parallel_linear.1
= control target key start
LH: loop header
LB: loop body
LE: loop exit
PB: predicated region body
PF: predicated region fallthrough
CT: control target
= control target key end

     0   :  { %8 = vsyncpa [#allocation4], 0  ;;  %s624_s12 = smov [#allocation3]   ;;  %s850_s0 = inlined_call_operand.vmem [shape: f32[128,128], index: 0, kind: input, shape index: {}]   ;;  %s851_s1 = inlined_call_operand.hbm [shape: f32[256,128], index: 1, kind: input, shape index: {}]   ;;  %s852_s2 = inlined_call_operand.vmem [shape: f32[1,256], index: 2, kind: input, shape index: {}]   ;;  %s853_s3 = inlined_call_operand.vmem [shape: f32[128,256], index: 3, kind: output, shape index: {}]  }
   0x1   :  { %s16_s13 = sshll.u32 %s624_s12, 4  ;;  %s600_s16 = scalar_lea.hbm %s851_s1, 4096  ;;  %s17_s13 = int_to_ptr.vmem [resolvable:$true] %s16_s13 }
   0x2   :  { %p601_p0 = scmp.ne.s32.totalorder %s851_s1, %s600_s16  ;;  %p604_p1 = scmp.lt.u32.totalorder %s600_s16, %s851_s1 }
   0x4   :  { %p606_p2 = pnand %p604_p1, %p601_p0 }
   0x6   :  { %609 = shalt.err (!%p606_p2)
}
   0x7   :  { %s610_s21 = scalar_lea.vmem %s17_s13, 4096  ;;  %p615_p4 = scmp.lt.s32.totalorder %s17_s13, %s17_s13 }
   0x8   :  { %p611_p3 = scmp.ne.s32.totalorder %s17_s13, %s610_s21  ;;  %p616_p5 = scmp.lt.s32.totalorder %s610_s21, %s610_s21 }
   0xa   :  { %p617_p6 = por %p616_p5, %p615_p4 }
   0xc   :  { %p618_p7 = pnand %p617_p6, %p611_p3 }
   0xe   :  { %621 = shalt.err (!%p618_p7)
}
   0xf   :  { %s625_s22 = smov 128   ;;  %s626_s23 = smov 8  }
  0x10   :  { %22 = dma.hbm_to_vmem [thread:$0]  %s851_s1, 4096, %s17_s13, [#allocation4], %s625_s22, %s625_s22, %s626_s23  }
  0x11   :  { %622 = dma.done.wait [#allocation4], 4096  }
  0x12   :  { %623 = vsyncadd [#allocation4], 4294963200  ;;  %v96_v0 = vld [vmem:[#allocation3 + $0x80] sm:$0xff]  ;;  %v97_v1 = vld [vmem:[#allocation3 + $0x88] sm:$0xff] }
  0x13   :  { %v80_v2 = vld [vmem:[#allocation3] sm:$0xff]  ;;  %v549_v3 = vpack.c.bf16 %v97_v1, %v96_v0  ;;  %v81_v4 = vld [vmem:[#allocation3 + $0x8] sm:$0xff]  ;;  %v98_v5 = vld [vmem:[#allocation3 + $0x90] sm:$0xff]  ;;  %v406_v0 = vlaneseq }
  0x14   :  { %v99_v6 = vld [vmem:[#allocation3 + $0x98] sm:$0xff]  ;;  %v551_v7 = vpack.c.bf16 %v81_v4, %v80_v2  ;;  %v82_v9 = vld [vmem:[#allocation3 + $0x10] sm:$0xff]  ;;  %v100_v11 = vld [vmem:[#allocation3 + $0xa0] sm:$0xff] }
  0x15   :  { %v553_v8 = vpack.c.bf16 %v99_v6, %v98_v5  ;;  %550 = vmatprep.subr.bf16.mxu0 %v549_v3  ;;  %581 = vmatprep.subr.bf16.mxu1 %v549_v3  ;;  %v83_v10 = vld [vmem:[#allocation3 + $0x18] sm:$0xff]  ;;  %v101_v12 = vld [vmem:[#allocation3 + $0xa8] sm:$0xff]  ;;  %v662_v15 = vld [vmem:[%s850_s0] sm:$0xff]  ;;  %v407_v1 = vshrl.u32 %v406_v0, 7 }
  0x16   :  { %552 = vmatpush3.bf16.xpose.msra.mxu0 %v551_v7  ;;  %589 = vmatpush3.bf16.xpose.msra.mxu1 %v551_v7  ;;  %v555_v13 = vpack.c.bf16 %v83_v10, %v82_v9  ;;  %v557_v14 = vpack.c.bf16 %v101_v12, %v100_v11  ;;  %v668_v16 = vld [vmem:[%s850_s0 + $0x40] sm:$0xff]  ;;  %v85_v18 = vld [vmem:[#allocation3 + $0x28] sm:$0xff]  ;;  %v102_v19 = vld [vmem:[#allocation3 + $0xb0] sm:$0xff] }
  0x17   :  { %554 = vmatprep.subr.bf16.mxu0 %v553_v8  ;;  %582 = vmatprep.subr.bf16.mxu1 %v553_v8  ;;  %v84_v17 = vld [vmem:[#allocation3 + $0x20] sm:$0xff]  ;;  %v103_v20 = vld [vmem:[#allocation3 + $0xb8] sm:$0xff]  ;;  %v86_v23 = vld [vmem:[#allocation3 + $0x30] sm:$0xff]  ;;  %v408_v2 = vsub.s32 0, %v407_v1  ;;  %v412_v4 = vsub.s32 1, %v407_v1 }
  0x18   :  { %517 = vmatprep.mubr.f32.mxu0 %v662_v15  ;;  %533 = vmatprep.mubr.f32.mxu1 %v668_v16  ;;  %v559_v21 = vpack.c.bf16 %v85_v18, %v84_v17  ;;  %v561_v22 = vpack.c.bf16 %v103_v20, %v102_v19  ;;  %v87_v24 = vld [vmem:[#allocation3 + $0x38] sm:$0xff]  ;;  %v104_v25 = vld [vmem:[#allocation3 + $0xc0] sm:$0xff]  ;;  %v105_v26 = vld [vmem:[#allocation3 + $0xc8] sm:$0xff] }
  0x19   :  { %v563_v27 = vpack.c.bf16 %v87_v24, %v86_v23  ;;  %v565_v28 = vpack.c.bf16 %v105_v26, %v104_v25  ;;  %v88_v29 = vld [vmem:[#allocation3 + $0x40] sm:$0xff]  ;;  %v89_v30 = vld [vmem:[#allocation3 + $0x48] sm:$0xff]  ;;  %v106_v31 = vld [vmem:[#allocation3 + $0xd0] sm:$0xff] }
  0x1a   :  { %v107_v32 = vld [vmem:[#allocation3 + $0xd8] sm:$0xff]  ;;  %v567_v33 = vpack.c.bf16 %v89_v30, %v88_v29  ;;  %v90_v35 = vld [vmem:[#allocation3 + $0x50] sm:$0xff]  ;;  %v108_v37 = vld [vmem:[#allocation3 + $0xe0] sm:$0xff] }
  0x1b   :  { %v569_v34 = vpack.c.bf16 %v107_v32, %v106_v31  ;;  %v91_v36 = vld [vmem:[#allocation3 + $0x58] sm:$0xff]  ;;  %v109_v38 = vld [vmem:[#allocation3 + $0xe8] sm:$0xff]  ;;  %v92_v41 = vld [vmem:[#allocation3 + $0x60] sm:$0xff] }
  0x1c   :  { %v571_v39 = vpack.c.bf16 %v91_v36, %v90_v35  ;;  %v573_v40 = vpack.c.bf16 %v109_v38, %v108_v37  ;;  %v93_v42 = vld [vmem:[#allocation3 + $0x68] sm:$0xff]  ;;  %v110_v43 = vld [vmem:[#allocation3 + $0xf0] sm:$0xff]  ;;  %v111_v44 = vld [vmem:[#allocation3 + $0xf8] sm:$0xff] }
  0x1d   :  { %v575_v45 = vpack.c.bf16 %v93_v42, %v92_v41  ;;  %v577_v46 = vpack.c.bf16 %v111_v44, %v110_v43  ;;  %v94_v47 = vld [vmem:[#allocation3 + $0x70] sm:$0xff]  ;;  %v95_v48 = vld [vmem:[#allocation3 + $0x78] sm:$0xff]  ;;  %v65_v50 = vld [vmem:[%s850_s0 + $0x8] sm:$0xff] }
  0x1e   :  { %556 = vmatpush3.bf16.xpose.msra.mxu0 %v555_v13  ;;  %590 = vmatpush3.bf16.xpose.msra.mxu1 %v555_v13  ;;  %v579_v49 = vpack.c.bf16 %v95_v48, %v94_v47  ;;  %v73_v51 = vld [vmem:[%s850_s0 + $0x48] sm:$0xff]  ;;  %v66_v52 = vld [vmem:[%s850_s0 + $0x10] sm:$0xff]  ;;  %v67_v54 = vld [vmem:[%s850_s0 + $0x18] sm:$0xff] }
  0x1f   :  { %558 = vmatprep.subr.bf16.mxu0 %v557_v14  ;;  %583 = vmatprep.subr.bf16.mxu1 %v557_v14  ;;  %v74_v53 = vld [vmem:[%s850_s0 + $0x50] sm:$0xff]  ;;  %v75_v55 = vld [vmem:[%s850_s0 + $0x58] sm:$0xff]  ;;  %v68_v56 = vld [vmem:[%s850_s0 + $0x20] sm:$0xff] }
  0x20   :  { %v76_v57 = vld [vmem:[%s850_s0 + $0x60] sm:$0xff]  ;;  %v69_v58 = vld [vmem:[%s850_s0 + $0x28] sm:$0xff]  ;;  %v70_v60 = vld [vmem:[%s850_s0 + $0x30] sm:$0xff] }
  0x21   :  { %v77_v59 = vld [vmem:[%s850_s0 + $0x68] sm:$0xff]  ;;  %v78_v61 = vld [vmem:[%s850_s0 + $0x70] sm:$0xff]  ;;  %v71_v62 = vld [vmem:[%s850_s0 + $0x38] sm:$0xff] }
  0x22   :  { %v79_v63 = vld [vmem:[%s850_s0 + $0x78] sm:$0xff]  ;;  %v404_v3 = vld [vmem:[%s852_s2] sm:$0x3] }
  0x23   :  { %v718_v5 = vrot.slane %v404_v3, %v408_v2  ;;  %v720_v6 = vrot.slane %v404_v3, %v412_v4 }
  0x26   :  { %560 = vmatpush3.bf16.xpose.msra.mxu0 %v559_v21  ;;  %591 = vmatpush3.bf16.xpose.msra.mxu1 %v559_v21 }
  0x27   :  { %562 = vmatprep.subr.bf16.mxu0 %v561_v22  ;;  %584 = vmatprep.subr.bf16.mxu1 %v561_v22 }
  0x2e   :  { %564 = vmatpush3.bf16.xpose.msra.mxu0 %v563_v27  ;;  %592 = vmatpush3.bf16.xpose.msra.mxu1 %v563_v27 }
  0x2f   :  { %566 = vmatprep.subr.bf16.mxu0 %v565_v28  ;;  %585 = vmatprep.subr.bf16.mxu1 %v565_v28 }
  0x36   :  { %568 = vmatpush3.bf16.xpose.msra.mxu0 %v567_v33  ;;  %593 = vmatpush3.bf16.xpose.msra.mxu1 %v567_v33 }
  0x37   :  { %570 = vmatprep.subr.bf16.mxu0 %v569_v34  ;;  %586 = vmatprep.subr.bf16.mxu1 %v569_v34 }
  0x3e   :  { %572 = vmatpush3.bf16.xpose.msra.mxu0 %v571_v39  ;;  %594 = vmatpush3.bf16.xpose.msra.mxu1 %v571_v39 }
  0x3f   :  { %574 = vmatprep.subr.bf16.mxu0 %v573_v40  ;;  %587 = vmatprep.subr.bf16.mxu1 %v573_v40 }
  0x46   :  { %576 = vmatpush3.bf16.xpose.msra.mxu0 %v575_v45  ;;  %595 = vmatpush3.bf16.xpose.msra.mxu1 %v575_v45 }
  0x47   :  { %578 = vmatprep.subr.bf16.mxu0 %v577_v46  ;;  %588 = vmatprep.subr.bf16.mxu1 %v577_v46 }
  0x4e   :  { %580 = vmatpush3.bf16.xpose.msra.mxu0 %v579_v49  ;;  %596 = vmatpush3.bf16.xpose.msra.mxu1 %v579_v49 }
  0x55   :  { %518 = vmatmul.mubr.f32.vlgmr.msra.gmra.mrb[0].mxu0 %v662_v15  ;;  %534 = vmatmul.mubr.f32.vlgmr.msra.gmra.mrb[0].mxu1 %v668_v16 }
  0x56   :  { %519 = vmatprep.mubr.f32.mxu0 %v65_v50  ;;  %535 = vmatprep.mubr.f32.mxu1 %v73_v51 }
  0x59   :  { %520 = vmatmul.mubr.f32.gmra.mrb[2].mxu0 %v65_v50  ;;  %536 = vmatmul.mubr.f32.gmra.mrb[2].mxu1 %v73_v51 }
  0x5a   :  { %521 = vmatprep.mubr.f32.mxu0 %v66_v52  ;;  %537 = vmatprep.mubr.f32.mxu1 %v74_v53 }
  0x5d   :  { %522 = vmatmul.mubr.f32.gmra.mrb[4].mxu0 %v66_v52  ;;  %538 = vmatmul.mubr.f32.gmra.mrb[4].mxu1 %v74_v53 }
  0x5e   :  { %523 = vmatprep.mubr.f32.mxu0 %v67_v54  ;;  %539 = vmatprep.mubr.f32.mxu1 %v75_v55 }
  0x61   :  { %524 = vmatmul.mubr.f32.gmra.mrb[6].mxu0 %v67_v54  ;;  %540 = vmatmul.mubr.f32.gmra.mrb[6].mxu1 %v75_v55 }
  0x62   :  { %525 = vmatprep.mubr.f32.mxu0 %v68_v56  ;;  %541 = vmatprep.mubr.f32.mxu1 %v76_v57 }
  0x65   :  { %526 = vmatmul.mubr.f32.gmra.mrb[8].mxu0 %v68_v56  ;;  %542 = vmatmul.mubr.f32.gmra.mrb[8].mxu1 %v76_v57 }
  0x66   :  { %527 = vmatprep.mubr.f32.mxu0 %v69_v58  ;;  %543 = vmatprep.mubr.f32.mxu1 %v77_v59 }
  0x69   :  { %528 = vmatmul.mubr.f32.gmra.mrb[10].mxu0 %v69_v58  ;;  %544 = vmatmul.mubr.f32.gmra.mrb[10].mxu1 %v77_v59 }
  0x6a   :  { %529 = vmatprep.mubr.f32.mxu0 %v70_v60  ;;  %545 = vmatprep.mubr.f32.mxu1 %v78_v61 }
  0x6d   :  { %530 = vmatmul.mubr.f32.gmra.mrb[12].mxu0 %v70_v60  ;;  %546 = vmatmul.mubr.f32.gmra.mrb[12].mxu1 %v78_v61 }
  0x6e   :  { %531 = vmatprep.mubr.f32.mxu0 %v71_v62  ;;  %547 = vmatprep.mubr.f32.mxu1 %v79_v63 }
  0x71   :  { %532 = vmatmul.mubr.f32.gmra.mrb[14].mxu0 %v71_v62  ;;  %548 = vmatmul.mubr.f32.gmra.mrb[14].mxu1 %v79_v63 }
 0x128   :  { %v210_v7 = vpop.f32.mrb[0].mxu0  ;;  %v258_v8 = vpop.f32.mrb[0].mxu1 }
 0x129   :  { %v416_v9 = vadd.f32 %v718_v5, %v210_v7  ;;  %v432_v10 = vadd.f32 %v718_v5, %v258_v8  ;;  %v212_v11 = vpop.f32.mrb[1].mxu0  ;;  %v260_v12 = vpop.f32.mrb[1].mxu1 }
 0x12a   :  { %v417_v13 = vadd.f32 %v720_v6, %v212_v11  ;;  %v433_v14 = vadd.f32 %v720_v6, %v260_v12 }
 0x12b   :  { %448 = vst [vmem:[%s853_s3] sm:$0xff] %v416_v9  ;;  %464 = vst [vmem:[%s853_s3 + $0x80] sm:$0xff] %v432_v10 }
 0x12c   :  { %449 = vst [vmem:[%s853_s3 + $0x8] sm:$0xff] %v417_v13  ;;  %465 = vst [vmem:[%s853_s3 + $0x88] sm:$0xff] %v433_v14  ;;  %v216_v15 = vpop.f32.mrb[2].mxu0  ;;  %v264_v16 = vpop.f32.mrb[2].mxu1 }
 0x12d   :  { %v418_v17 = vadd.f32 %v718_v5, %v216_v15  ;;  %v434_v18 = vadd.f32 %v718_v5, %v264_v16  ;;  %v218_v19 = vpop.f32.mrb[3].mxu0  ;;  %v266_v20 = vpop.f32.mrb[3].mxu1 }
 0x12e   :  { %v419_v21 = vadd.f32 %v720_v6, %v218_v19  ;;  %v435_v22 = vadd.f32 %v720_v6, %v266_v20 }
 0x12f   :  { %450 = vst [vmem:[%s853_s3 + $0x10] sm:$0xff] %v418_v17  ;;  %466 = vst [vmem:[%s853_s3 + $0x90] sm:$0xff] %v434_v18 }
 0x130   :  { %451 = vst [vmem:[%s853_s3 + $0x18] sm:$0xff] %v419_v21  ;;  %467 = vst [vmem:[%s853_s3 + $0x98] sm:$0xff] %v435_v22  ;;  %v222_v23 = vpop.f32.mrb[4].mxu0  ;;  %v270_v24 = vpop.f32.mrb[4].mxu1 }
 0x131   :  { %v420_v25 = vadd.f32 %v718_v5, %v222_v23  ;;  %v436_v26 = vadd.f32 %v718_v5, %v270_v24  ;;  %v224_v27 = vpop.f32.mrb[5].mxu0  ;;  %v272_v28 = vpop.f32.mrb[5].mxu1 }
 0x132   :  { %v421_v29 = vadd.f32 %v720_v6, %v224_v27  ;;  %v437_v30 = vadd.f32 %v720_v6, %v272_v28 }
 0x133   :  { %452 = vst [vmem:[%s853_s3 + $0x20] sm:$0xff] %v420_v25  ;;  %468 = vst [vmem:[%s853_s3 + $0xa0] sm:$0xff] %v436_v26 }
 0x134   :  { %453 = vst [vmem:[%s853_s3 + $0x28] sm:$0xff] %v421_v29  ;;  %469 = vst [vmem:[%s853_s3 + $0xa8] sm:$0xff] %v437_v30  ;;  %v228_v31 = vpop.f32.mrb[6].mxu0  ;;  %v276_v32 = vpop.f32.mrb[6].mxu1 }
 0x135   :  { %v422_v33 = vadd.f32 %v718_v5, %v228_v31  ;;  %v438_v34 = vadd.f32 %v718_v5, %v276_v32  ;;  %v230_v35 = vpop.f32.mrb[7].mxu0  ;;  %v278_v36 = vpop.f32.mrb[7].mxu1 }
 0x136   :  { %v423_v37 = vadd.f32 %v720_v6, %v230_v35  ;;  %v439_v38 = vadd.f32 %v720_v6, %v278_v36 }
 0x137   :  { %454 = vst [vmem:[%s853_s3 + $0x30] sm:$0xff] %v422_v33  ;;  %470 = vst [vmem:[%s853_s3 + $0xb0] sm:$0xff] %v438_v34 }
 0x138   :  { %455 = vst [vmem:[%s853_s3 + $0x38] sm:$0xff] %v423_v37  ;;  %471 = vst [vmem:[%s853_s3 + $0xb8] sm:$0xff] %v439_v38  ;;  %v234_v39 = vpop.f32.mrb[8].mxu0  ;;  %v282_v40 = vpop.f32.mrb[8].mxu1 }
 0x139   :  { %v424_v41 = vadd.f32 %v718_v5, %v234_v39  ;;  %v440_v42 = vadd.f32 %v718_v5, %v282_v40  ;;  %v236_v43 = vpop.f32.mrb[9].mxu0  ;;  %v284_v44 = vpop.f32.mrb[9].mxu1 }
 0x13a   :  { %v425_v45 = vadd.f32 %v720_v6, %v236_v43  ;;  %v441_v46 = vadd.f32 %v720_v6, %v284_v44 }
 0x13b   :  { %456 = vst [vmem:[%s853_s3 + $0x40] sm:$0xff] %v424_v41  ;;  %472 = vst [vmem:[%s853_s3 + $0xc0] sm:$0xff] %v440_v42 }
 0x13c   :  { %457 = vst [vmem:[%s853_s3 + $0x48] sm:$0xff] %v425_v45  ;;  %473 = vst [vmem:[%s853_s3 + $0xc8] sm:$0xff] %v441_v46  ;;  %v240_v47 = vpop.f32.mrb[10].mxu0  ;;  %v288_v48 = vpop.f32.mrb[10].mxu1 }
 0x13d   :  { %v426_v49 = vadd.f32 %v718_v5, %v240_v47  ;;  %v442_v50 = vadd.f32 %v718_v5, %v288_v48  ;;  %v242_v51 = vpop.f32.mrb[11].mxu0  ;;  %v290_v52 = vpop.f32.mrb[11].mxu1 }
 0x13e   :  { %v427_v53 = vadd.f32 %v720_v6, %v242_v51  ;;  %v443_v54 = vadd.f32 %v720_v6, %v290_v52 }
 0x13f   :  { %458 = vst [vmem:[%s853_s3 + $0x50] sm:$0xff] %v426_v49  ;;  %474 = vst [vmem:[%s853_s3 + $0xd0] sm:$0xff] %v442_v50 }
 0x140   :  { %459 = vst [vmem:[%s853_s3 + $0x58] sm:$0xff] %v427_v53  ;;  %475 = vst [vmem:[%s853_s3 + $0xd8] sm:$0xff] %v443_v54  ;;  %v246_v55 = vpop.f32.mrb[12].mxu0  ;;  %v294_v56 = vpop.f32.mrb[12].mxu1 }
 0x141   :  { %v428_v57 = vadd.f32 %v718_v5, %v246_v55  ;;  %v444_v58 = vadd.f32 %v718_v5, %v294_v56  ;;  %v248_v59 = vpop.f32.mrb[13].mxu0  ;;  %v296_v60 = vpop.f32.mrb[13].mxu1 }
 0x142   :  { %v429_v61 = vadd.f32 %v720_v6, %v248_v59  ;;  %v445_v62 = vadd.f32 %v720_v6, %v296_v60 }
 0x143   :  { %460 = vst [vmem:[%s853_s3 + $0x60] sm:$0xff] %v428_v57  ;;  %476 = vst [vmem:[%s853_s3 + $0xe0] sm:$0xff] %v444_v58 }
 0x144   :  { %461 = vst [vmem:[%s853_s3 + $0x68] sm:$0xff] %v429_v61  ;;  %477 = vst [vmem:[%s853_s3 + $0xe8] sm:$0xff] %v445_v62  ;;  %v252_v63 = vpop.f32.mrb[14].mxu0  ;;  %v300_v0 = vpop.f32.mrb[14].mxu1 }
 0x145   :  { %v430_v1 = vadd.f32 %v718_v5, %v252_v63  ;;  %v446_v2 = vadd.f32 %v718_v5, %v300_v0  ;;  %v254_v3 = vpop.f32.mrb[15].mxu0  ;;  %v302_v4 = vpop.f32.mrb[15].mxu1 }
 0x146   :  { %v431_v7 = vadd.f32 %v720_v6, %v254_v3  ;;  %v447_v8 = vadd.f32 %v720_v6, %v302_v4 }
 0x147   :  { %462 = vst [vmem:[%s853_s3 + $0x70] sm:$0xff] %v430_v1  ;;  %478 = vst [vmem:[%s853_s3 + $0xf0] sm:$0xff] %v446_v2 }
 0x148   :  { %463 = vst [vmem:[%s853_s3 + $0x78] sm:$0xff] %v431_v7  ;;  %479 = vst [vmem:[%s853_s3 + $0xf8] sm:$0xff] %v447_v8 }
 0x149   :  { %484 = vsyncpa [#allocation4], 1 }

</bundles_post_ra>
